<compile_context>
chip_gen: v5e
topology: v5e:2x2
jax: 0.10.0
libtpu: 0.0.40
codegen_flags: <defaults>
</compile_context>

<pallas_src>
import math

import jax
import jax.numpy as jnp
from jax.experimental import pallas as pl
from jax.experimental.pallas import tpu as pltpu

_STEP_DATA_BYTES = 4 << 20      # target bytes moved per grid step (inputs + output)
_DEFAULT_VMEM_CAP = 64 << 20    # conservative physical VMEM (v7x per-TC)


def _vmem_capacity_bytes():
    try:
        return int(pltpu.get_tpu_info().vmem_capacity_bytes)
    except Exception:
        return _DEFAULT_VMEM_CAP


def _make_concat_kernel_3d(channel_sizes, offsets):
    """Blocks are (TP, C_k, tile); concat axis on sublanes, lanes dense."""
    def kernel(*refs):
        out_ref = refs[-1]
        for r, c, o in zip(refs[:-1], channel_sizes, offsets):
            out_ref[:, o:o + c, :] = r[...]
    return kernel


def _make_concat_kernel_2d(channel_sizes, offsets):
    """Blocks are (TP, C_k); concat axis on lanes (concat along last dim)."""
    def kernel(*refs):
        out_ref = refs[-1]
        for r, c, o in zip(refs[:-1], channel_sizes, offsets):
            out_ref[:, o:o + c] = r[...]
    return kernel


def concat(xs, dimension=1):
    """Pallas equivalent of torch.cat(xs, dim=dimension)."""
    assert len(xs) >= 1, "need at least one tensor"
    ndim = xs[0].ndim
    d = dimension % ndim
    base = xs[0].shape
    dtype = xs[0].dtype
    for x in xs[1:]:
        assert x.ndim == ndim and x.dtype == dtype
        assert x.shape[:d] == base[:d] and x.shape[d + 1:] == base[d + 1:]

    # torch.cat tolerates zero-sized pieces: nothing to copy for those.
    xs = [x for x in xs if x.shape[d] > 0]
    cs = [int(x.shape[d]) for x in xs]
    c_total = sum(cs)

    pre = math.prod(base[:d])
    post = math.prod(base[d + 1:])
    out_shape_full = base[:d] + (c_total,) + base[d + 1:]

    if c_total == 0 or pre == 0 or post == 0:
        return jnp.zeros(out_shape_full, dtype)

    offsets = []
    off = 0
    for c in cs:
        offsets.append(off)
        off += c

    itemsize = jnp.dtype(dtype).itemsize
    vmem_cap = _vmem_capacity_bytes()
    # Footprint = 2 (double-buffer) * (inputs + output) = 4x the output block,
    # so keep the per-step data budget well under vmem_cap / 4.
    step_budget = max(1, min(_STEP_DATA_BYTES, vmem_cap // 6))

    if post > 1:
        # 3-D layout (pre, C, post): concat axis on sublanes, lanes dense.
        bytes_per_lane = 2 * c_total * itemsize               # in + out, TP=1
        lane_budget = max(1, step_budget // bytes_per_lane)
        if post <= lane_budget:
            tile = post                                       # full lane extent
            row_bytes = 2 * c_total * post * itemsize         # per unit of pre
            tp = int(max(1, min(pre, step_budget // row_bytes)))
        else:
            tile = max(128, (lane_budget // 128) * 128)       # lane-dense tile
            tile = min(tile, post)
            tp = 1
        n_pre = pl.cdiv(pre, tp)
        n_lane = pl.cdiv(post, tile)
        block_out_bytes = tp * c_total * tile * itemsize

        xs_r = [x.reshape(pre, c, post) for x, c in zip(xs, cs)]
        in_specs = [pl.BlockSpec((tp, c, tile), lambda i, j: (i, 0, j)) for c in cs]
        out_spec = pl.BlockSpec((tp, c_total, tile), lambda i, j: (i, 0, j))
        grid = (n_pre, n_lane)
        semantics = ("parallel", "parallel")
        kernel = _make_concat_kernel_3d(cs, offsets)
        out_flat_shape = (pre, c_total, post)
    else:
        # Concat along the last axis: 2-D layout (pre, C), concat on lanes.
        row_bytes = 2 * c_total * itemsize
        tp = int(max(1, min(pre, step_budget // row_bytes)))
        if tp < pre:
            tp = min(pre, max(8, (tp // 8) * 8))              # sublane-aligned blocks
        n_pre = pl.cdiv(pre, tp)
        block_out_bytes = tp * c_total * itemsize

        xs_r = [x.reshape(pre, c) for x, c in zip(xs, cs)]
        in_specs = [pl.BlockSpec((tp, c), lambda i: (i, 0)) for c in cs]
        out_spec = pl.BlockSpec((tp, c_total), lambda i: (i, 0))
        grid = (n_pre,)
        semantics = ("parallel",)
        kernel = _make_concat_kernel_2d(cs, offsets)
        out_flat_shape = (pre, c_total)

    footprint = 4 * block_out_bytes                           # double-buffered in+out
    vmem_limit = int(min(vmem_cap, max(footprint + (2 << 20), 32 << 20)))

    out_flat = pl.pallas_call(
        kernel,
        out_shape=jax.ShapeDtypeStruct(out_flat_shape, dtype),
        grid_spec=pltpu.PrefetchScalarGridSpec(
            num_scalar_prefetch=0,
            grid=grid,
            in_specs=in_specs,
            out_specs=out_spec,
        ),
        compiler_params=pltpu.CompilerParams(
            dimension_semantics=semantics,
            vmem_limit_bytes=vmem_limit,
        ),
    )(*xs_r)

    return out_flat.reshape(out_shape_full)


if __name__ == "__main__":
    key = jax.random.PRNGKey(0)
    k1, k2, k3, k4, k5 = jax.random.split(key, 5)

    # 1) Three NCHW feature maps concatenated along channels (Concat(dimension=1)).
    x1 = jax.random.normal(k1, (2, 8, 16, 16), dtype=jnp.float32)
    x2 = jax.random.normal(k2, (2, 16, 16, 16), dtype=jnp.float32)
    x3 = jax.random.normal(k3, (2, 8, 16, 16), dtype=jnp.float32)
    out = jax.block_until_ready(concat([x1, x2, x3], dimension=1))
    ref = jnp.concatenate([x1, x2, x3], axis=1)
    assert out.shape == (2, 32, 16, 16)
    assert jnp.array_equal(out, ref), "mismatch vs jnp.concatenate (dim=1)"

    # 2) Concat along the last axis (exercises the lane-axis 2-D path).
    y1 = jax.random.normal(k4, (2, 4, 8, 128), dtype=jnp.float32)
    y2 = jax.random.normal(k5, (2, 4, 8, 128), dtype=jnp.float32)
    out2 = jax.block_until_ready(concat([y1, y2], dimension=-1))
    ref2 = jnp.concatenate([y1, y2], axis=-1)
    assert out2.shape == (2, 4, 8, 256)
    assert jnp.array_equal(out2, ref2), "mismatch vs jnp.concatenate (dim=-1)"

    print("KERNEL_OK")
</pallas_src>

<mosaic_0001>
module attributes {stable_mosaic.version = 11 : i64} {
  func.func @kernel(%arg0: i32, %arg1: i32, %arg2: memref<2x8x256xf32, #tpu.memory_space<vmem>>, %arg3: memref<2x16x256xf32, #tpu.memory_space<vmem>>, %arg4: memref<2x8x256xf32, #tpu.memory_space<vmem>>, %arg5: memref<2x32x256xf32, #tpu.memory_space<vmem>>) attributes {dimension_semantics = [#tpu.dimension_semantics<parallel>, #tpu.dimension_semantics<parallel>], iteration_bounds = array<i64: 1, 1>, scalar_prefetch = 0 : i64, scratch_operands = 0 : i64, tpu.core_type = #tpu.core_type<tc>, window_params = [{transform_indices = @transform_0, window_bounds = array<i64: 2, 8, 256>}, {transform_indices = @transform_1, window_bounds = array<i64: 2, 16, 256>}, {transform_indices = @transform_2, window_bounds = array<i64: 2, 8, 256>}, {transform_indices = @transform_3, window_bounds = array<i64: 2, 32, 256>}]} {
    %c0 = arith.constant 0 : index
    %c0_0 = arith.constant 0 : index
    %c0_1 = arith.constant 0 : index
    %0 = vector.load %arg2[%c0, %c0_0, %c0_1] : memref<2x8x256xf32, #tpu.memory_space<vmem>>, vector<2x8x256xf32>
    %c0_2 = arith.constant 0 : index
    %c0_3 = arith.constant 0 : index
    %c0_4 = arith.constant 0 : index
    %1 = vector.load %arg5[%c0_2, %c0_3, %c0_4] : memref<2x32x256xf32, #tpu.memory_space<vmem>>, vector<2x8x256xf32>
    tpu.vector_store %arg5[%c0_2, %c0_3, %c0_4], %0 {strides = array<i32>} : memref<2x32x256xf32, #tpu.memory_space<vmem>>, vector<2x8x256xf32>,
    %c0_5 = arith.constant 0 : index
    %c0_6 = arith.constant 0 : index
    %c0_7 = arith.constant 0 : index
    %2 = vector.load %arg3[%c0_5, %c0_6, %c0_7] : memref<2x16x256xf32, #tpu.memory_space<vmem>>, vector<2x16x256xf32>
    %c0_8 = arith.constant 0 : index
    %c8 = arith.constant 8 : index
    %c0_9 = arith.constant 0 : index
    %3 = vector.load %arg5[%c0_8, %c8, %c0_9] : memref<2x32x256xf32, #tpu.memory_space<vmem>>, vector<2x16x256xf32>
    tpu.vector_store %arg5[%c0_8, %c8, %c0_9], %2 {strides = array<i32>} : memref<2x32x256xf32, #tpu.memory_space<vmem>>, vector<2x16x256xf32>,
    %c0_10 = arith.constant 0 : index
    %c0_11 = arith.constant 0 : index
    %c0_12 = arith.constant 0 : index
    %4 = vector.load %arg4[%c0_10, %c0_11, %c0_12] : memref<2x8x256xf32, #tpu.memory_space<vmem>>, vector<2x8x256xf32>
    %c0_13 = arith.constant 0 : index
    %c24 = arith.constant 24 : index
    %c0_14 = arith.constant 0 : index
    %5 = vector.load %arg5[%c0_13, %c24, %c0_14] : memref<2x32x256xf32, #tpu.memory_space<vmem>>, vector<2x8x256xf32>
    tpu.vector_store %arg5[%c0_13, %c24, %c0_14], %4 {strides = array<i32>} : memref<2x32x256xf32, #tpu.memory_space<vmem>>, vector<2x8x256xf32>,
    return
  }
  func.func @transform_0(%arg0: i32, %arg1: i32) -> (i32, i32, i32) {
    %c0_i32 = arith.constant 0 : i32
    %c0_i32_0 = arith.constant 0 : i32
    return %arg0, %c0_i32, %arg1 : i32, i32, i32
  }
  func.func @transform_1(%arg0: i32, %arg1: i32) -> (i32, i32, i32) {
    %c0_i32 = arith.constant 0 : i32
    %c0_i32_0 = arith.constant 0 : i32
    return %arg0, %c0_i32, %arg1 : i32, i32, i32
  }
  func.func @transform_2(%arg0: i32, %arg1: i32) -> (i32, i32, i32) {
    %c0_i32 = arith.constant 0 : i32
    %c0_i32_0 = arith.constant 0 : i32
    return %arg0, %c0_i32, %arg1 : i32, i32, i32
  }
  func.func @transform_3(%arg0: i32, %arg1: i32) -> (i32, i32, i32) {
    %c0_i32 = arith.constant 0 : i32
    %c0_i32_0 = arith.constant 0 : i32
    return %arg0, %c0_i32, %arg1 : i32, i32, i32
  }
}

</mosaic_0001>

<bundles_post_ra>
// kernel: tpu_custom_call.1
= control target key start
LH: loop header
LB: loop body
LE: loop exit
PB: predicated region body
PF: predicated region fallthrough
CT: control target
= control target key end

     0   :  { %8 = vsyncpa [#allocation3], 0  ;;  %s272_s0 = inlined_call_operand.hbm [shape: f32[2,8,256], index: 0, kind: input, shape index: {}]   ;;  %s273_s1 = inlined_call_operand.hbm [shape: f32[2,16,256], index: 1, kind: input, shape index: {}]   ;;  %s274_s2 = inlined_call_operand.hbm [shape: f32[2,8,256], index: 2, kind: input, shape index: {}]   ;;  %s275_s3 = inlined_call_operand.hbm [shape: f32[2,32,256], index: 3, kind: output, shape index: {}]  }
   0x1   :  { %9 = vsyncpa [#allocation6], 0 }
   0x2   :  { %10 = vsyncpa [#allocation4], 0  ;;  %s28_s14 = sshll.u32 %s273_s1, 4  ;;  %s222_s15 = smov [#allocation5]   ;;  %s29_s14 = int_to_ptr.hbm [resolvable:$true] %s28_s14 }
   0x3   :  { %s30_s16 = sshll.u32 %s222_s15, 4  ;;  %s15_s19 = sshll.u32 %s272_s0, 4  ;;  %s31_s16 = int_to_ptr.vmem [resolvable:$true] %s30_s16  ;;  %s16_s19 = int_to_ptr.hbm [resolvable:$true] %s15_s19 }
   0x4   :  { %s223_s20 = smov 256   ;;  %s224_s21 = smov 16  }
   0x5   :  { %36 = dma.hbm_to_vmem [thread:$0]  %s29_s14, 1024, %s31_s16, [#allocation6], %s223_s20, %s223_s20, %s224_s21  }
   0x6   :  { %s225_s22 = smov [#allocation2]   ;;  %s41_s1 = sshll.u32 %s274_s2, 4  ;;  %s42_s1 = int_to_ptr.hbm [resolvable:$true] %s41_s1 }
   0x7   :  { %s17_s23 = sshll.u32 %s225_s22, 4  ;;  %s226_s0 = smov [#allocation7]   ;;  %s18_s23 = int_to_ptr.vmem [resolvable:$true] %s17_s23 }
   0x8   :  { %23 = dma.hbm_to_vmem [thread:$0]  %s16_s19, 512, %s18_s23, [#allocation3], %s223_s20, %s223_s20, %s224_s21  }
   0x9   :  { %s43_s26 = sshll.u32 %s226_s0, 4  ;;  %s44_s26 = int_to_ptr.vmem [resolvable:$true] %s43_s26 }
   0xa   :  { %49 = dma.hbm_to_vmem [thread:$0]  %s42_s1, 512, %s44_s26, [#allocation6], %s223_s20, %s223_s20, %s224_s21  }
   0xb   :  { %216 = dma.done.wait [#allocation3], 512  }
   0xc   :  { %217 = vsyncadd [#allocation3], 4294966784 }
   0xd   :  { %218 = dma.done.wait [#allocation6], 1536  }
   0xe   :  { %219 = vsyncadd [#allocation6], 4294965760  ;;  %v62_v0 = vld [vmem:[#allocation2] sm:$0xff]  ;;  %v63_v1 = vld [vmem:[#allocation2 + $0x8] sm:$0xff]  ;;  %s227_s2 = smov [#allocation8]   ;;  %s100_s30 = sshll.u32 %s275_s3, 4  ;;  %s101_s30 = int_to_ptr.hbm [resolvable:$true] %s100_s30 }
   0xf   :  { %v64_v2 = vld [vmem:[#allocation2 + $0x10] sm:$0xff]  ;;  %66 = vst [vmem:[#allocation8] sm:$0xff] %v62_v0  ;;  %v65_v3 = vld [vmem:[#allocation2 + $0x18] sm:$0xff]  ;;  %v70_v4 = vld [vmem:[#allocation5] sm:$0xff]  ;;  %s98_s27 = sshll.u32 %s227_s2, 4  ;;  %s99_s27 = int_to_ptr.vmem [resolvable:$true] %s98_s27 }
  0x10   :  { %67 = vst [vmem:[#allocation8 + $0x8] sm:$0xff] %v63_v1  ;;  %v71_v5 = vld [vmem:[#allocation5 + $0x8] sm:$0xff]  ;;  %v72_v6 = vld [vmem:[#allocation5 + $0x10] sm:$0xff]  ;;  %v73_v7 = vld [vmem:[#allocation5 + $0x18] sm:$0xff] }
  0x11   :  { %68 = vst [vmem:[#allocation8 + $0x40] sm:$0xff] %v64_v2  ;;  %v74_v8 = vld [vmem:[#allocation5 + $0x20] sm:$0xff]  ;;  %v75_v9 = vld [vmem:[#allocation5 + $0x28] sm:$0xff]  ;;  %v76_v10 = vld [vmem:[#allocation5 + $0x30] sm:$0xff] }
  0x12   :  { %69 = vst [vmem:[#allocation8 + $0x48] sm:$0xff] %v65_v3  ;;  %v77_v11 = vld [vmem:[#allocation5 + $0x38] sm:$0xff]  ;;  %v86_v12 = vld [vmem:[#allocation7] sm:$0xff]  ;;  %v87_v13 = vld [vmem:[#allocation7 + $0x8] sm:$0xff] }
  0x13   :  { %78 = vst [vmem:[#allocation8 + $0x10] sm:$0xff] %v70_v4  ;;  %v88_v14 = vld [vmem:[#allocation7 + $0x10] sm:$0xff]  ;;  %v89_v15 = vld [vmem:[#allocation7 + $0x18] sm:$0xff] }
  0x14   :  { %79 = vst [vmem:[#allocation8 + $0x18] sm:$0xff] %v71_v5 }
  0x15   :  { %80 = vst [vmem:[#allocation8 + $0x20] sm:$0xff] %v72_v6 }
  0x16   :  { %81 = vst [vmem:[#allocation8 + $0x28] sm:$0xff] %v73_v7 }
  0x17   :  { %82 = vst [vmem:[#allocation8 + $0x50] sm:$0xff] %v74_v8 }
  0x18   :  { %83 = vst [vmem:[#allocation8 + $0x58] sm:$0xff] %v75_v9 }
  0x19   :  { %84 = vst [vmem:[#allocation8 + $0x60] sm:$0xff] %v76_v10 }
  0x1a   :  { %85 = vst [vmem:[#allocation8 + $0x68] sm:$0xff] %v77_v11 }
  0x1b   :  { %90 = vst [vmem:[#allocation8 + $0x30] sm:$0xff] %v86_v12 }
  0x1c   :  { %91 = vst [vmem:[#allocation8 + $0x38] sm:$0xff] %v87_v13 }
  0x1d   :  { %92 = vst [vmem:[#allocation8 + $0x70] sm:$0xff] %v88_v14 }
  0x1e   :  { %93 = vst [vmem:[#allocation8 + $0x78] sm:$0xff] %v89_v15 }
  0x1f   :  { %106 = dma.vmem_to_hbm [thread:$0]  %s99_s27, 2048, %s101_s30, [#allocation4], %s223_s20, %s223_s20, %s224_s21  }
  0x20   :  { %220 = dma.done.wait [#allocation4], 2048  }
  0x21   :  { %221 = vsyncadd [#allocation4], 4294965248 }
  0x22   :  { %111 = vsyncpa [#allocation3], 1 }
  0x23   :  { %112 = vsyncpa [#allocation6], 1 }
  0x24   :  { %113 = vsyncpa [#allocation4], 1 }

</bundles_post_ra>
